<compile_context>
chip_gen: v7x
topology: tpu7x:2x2x1
jax: 0.10.0
libtpu: 0.0.40
codegen_flags: <defaults>
</compile_context>

<pallas_src>
import jax
import jax.numpy as jnp
from jax.experimental import pallas as pl
from jax.experimental.pallas import tpu as pltpu


_LANES = 128            # full vreg lane width -> unmasked vector stores
_MAX_BLOCK_ROWS = 2048  # (2048, 128) f32 = 1 MiB/block; ~4 MiB w/ dbl-buffered in+out
_MIN_SPLIT_ROWS = 16    # below this, one full-extent block (splitting buys nothing)
_VMEM_LIMIT_BYTES = 32 * 1024 * 1024  # explicit scoped-VMEM budget (<= physical on all gens)


def _feature_map_kernel(x_ref, o_ref):
    # Elementwise encode of one tile.  The base-class contract defines no
    # transform, so this is the identity encoding; a concrete feature map
    # (e.g. softmax random features) would compute its exp / projection here
    # (keep intermediates f32 on v5e — no bf16 VPU/EUP there).
    o_ref[...] = x_ref[...]


def _choose_block_rows(rows):
    """Pick a row-block size: multiple of 8, <= _MAX_BLOCK_ROWS, and yielding
    at least 2 grid steps when the input is big enough (v7x megacore +
    pipelining).  Tiny inputs use a single full-extent block."""
    if rows < _MIN_SPLIT_ROWS:
        return rows  # full-extent block: legal even if rows % 8 != 0
    half = -(-rows // 2)          # ceil(rows / 2)
    half = -(-half // 8) * 8      # round up to a sublane multiple
    return min(_MAX_BLOCK_ROWS, half)


def _feature_map_pallas(x):
    """Apply the (base-class) feature-map encoding via a Pallas TPU kernel.

    x: arbitrary-shape array (typically (batch, seq, query_dims)).
    Returns an array of the same shape and dtype.
    """
    orig_shape = x.shape
    n = x.size

    if n % _LANES == 0:
        # Lane-dense view: every vreg uses all 128 lanes, stores are
        # unmasked `vst`.  Pure flatten/regroup reshape (no data movement).
        rows, cols = n // _LANES, _LANES
    else:
        # Ragged total size: keep the natural (leading, D) 2-D view with a
        # full-extent last-dim block.  Masked stores, but NO pad / NO slice,
        # so no extra HBM round trips.
        cols = orig_shape[-1] if x.ndim >= 1 else 1
        rows = n // cols
    x2d = x.reshape(rows, cols)

    block_rows = _choose_block_rows(rows)
    grid_rows = pl.cdiv(rows, block_rows)  # ragged last block handled by Pallas

    out2d = pl.pallas_call(
        _feature_map_kernel,
        out_shape=jax.ShapeDtypeStruct((rows, cols), x.dtype),
        grid=(grid_rows,),
        in_specs=[pl.BlockSpec((block_rows, cols), lambda i: (i, 0))],
        out_specs=pl.BlockSpec((block_rows, cols), lambda i: (i, 0)),
        compiler_params=pltpu.CompilerParams(
            dimension_semantics=("parallel",),
            vmem_limit_bytes=_VMEM_LIMIT_BYTES,
        ),
    )(x2d)

    return out2d.reshape(orig_shape)


class FeatureMap:
    """JAX port of the scatterbrain FeatureMap interface."""

    def __init__(self, query_dims):
        self.query_dims = query_dims

    def new_feature_map(self, device=None):
        """Base class has no random parameters to (re)sample; no-op here."""
        # Concrete random-feature subclasses would resample projection
        # matrices here (deterministically seeded in-script).
        return None

    def forward_queries(self, x):
        """Encode the queries `x` using this feature map."""
        return self(x)

    def forward_keys(self, x):
        """Encode the keys `x` using this feature map."""
        return self(x)

    def forward(self, x):
        """Encode x using this feature map (symmetric path).

        The PyTorch base class raises NotImplementedError; here we lower the
        encode hot path to a Pallas kernel (identity transform for the base
        interface).
        """
        assert x.shape[-1] == self.query_dims, (
            f"expected last dim {self.query_dims}, got {x.shape[-1]}"
        )
        return _feature_map_pallas(x)

    def __call__(self, x):
        return self.forward(x)

    @classmethod
    def factory(cls, *args, **kwargs):
        def inner(query_dims):
            return cls(query_dims, *args, **kwargs)
        return inner


if __name__ == "__main__":
    key = jax.random.PRNGKey(0)
    B, S, D = 2, 8, 32  # batch, seq, query_dims
    x = jax.random.normal(key, (B, S, D), dtype=jnp.float32)

    fmap = FeatureMap.factory()(query_dims=D)
    fmap.new_feature_map(device=None)

    q_enc = fmap.forward_queries(x)
    k_enc = fmap.forward_keys(x)
    jax.block_until_ready(q_enc)
    jax.block_until_ready(k_enc)

    # Sanity: base-class encoding is the identity pass-through.
    assert q_enc.shape == x.shape and q_enc.dtype == x.dtype
    assert jnp.allclose(q_enc, x) and jnp.allclose(k_enc, x)

    # Lane-dense multi-block path (grid >= 2, ragged final row-block, no pad).
    xb = jax.random.normal(jax.random.PRNGKey(1), (4, 300, D), dtype=jnp.float32)
    yb = FeatureMap.factory()(query_dims=D)(xb)
    jax.block_until_ready(yb)
    assert yb.shape == xb.shape and jnp.allclose(yb, xb)

    # Ragged total size (numel % 128 != 0): full-extent last-dim path, no pad/slice.
    Dr = 5
    xr = jax.random.normal(jax.random.PRNGKey(2), (3, 7, Dr), dtype=jnp.float32)
    yr = FeatureMap.factory()(query_dims=Dr)(xr)
    jax.block_until_ready(yr)
    assert yr.shape == xr.shape and jnp.allclose(yr, xr)

    print("KERNEL_OK")
</pallas_src>

<mosaic_0001>
module attributes {stable_mosaic.version = 11 : i64} {
  func.func @_feature_map_kernel(%arg0: i32, %arg1: memref<4x128xf32, #tpu.memory_space<vmem>>, %arg2: memref<4x128xf32, #tpu.memory_space<vmem>>) attributes {dimension_semantics = [#tpu.dimension_semantics<parallel>], iteration_bounds = array<i64: 1>, scalar_prefetch = 0 : i64, scratch_operands = 0 : i64, tpu.core_type = #tpu.core_type<tc>, window_params = [{transform_indices = @transform_0, window_bounds = array<i64: 4, 128>}, {transform_indices = @transform_1, window_bounds = array<i64: 4, 128>}]} {
    %c0 = arith.constant 0 : index
    %c0_0 = arith.constant 0 : index
    %0 = vector.load %arg1[%c0, %c0_0] : memref<4x128xf32, #tpu.memory_space<vmem>>, vector<4x128xf32>
    %c0_1 = arith.constant 0 : index
    %c0_2 = arith.constant 0 : index
    %1 = vector.load %arg2[%c0_1, %c0_2] : memref<4x128xf32, #tpu.memory_space<vmem>>, vector<4x128xf32>
    tpu.vector_store %arg2[%c0_1, %c0_2], %0 {strides = array<i32>} : memref<4x128xf32, #tpu.memory_space<vmem>>, vector<4x128xf32>,
    return
  }
  func.func @transform_0(%arg0: i32) -> (i32, i32) {
    %c0_i32 = arith.constant 0 : i32
    %c0_i32_0 = arith.constant 0 : i32
    return %arg0, %c0_i32 : i32, i32
  }
  func.func @transform_1(%arg0: i32) -> (i32, i32) {
    %c0_i32 = arith.constant 0 : i32
    %c0_i32_0 = arith.constant 0 : i32
    return %arg0, %c0_i32 : i32, i32
  }
}

</mosaic_0001>

<bundles_post_ra>
// kernel: tpu_custom_call.1
= control target key start
LH: loop header
LB: loop body
LE: loop exit
PB: predicated region body
PF: predicated region fallthrough
CT: control target
= control target key end

     0   :  { %6 = vsyncpa [#allocation3], 0  ;;  %s124_s0 = inlined_call_operand.hbm [shape: f32[4,128], index: 0, kind: input, shape index: {}]   ;;  %s125_s1 = inlined_call_operand.hbm [shape: f32[4,128], index: 1, kind: output, shape index: {}]  }
   0x1   :  { %7 = vsyncpa [#allocation4], 0  ;;  %s88_s6 = smov [#allocation2]   ;;  %s40_s10 = scalar_lea.hbm %s124_s0, 64 }
   0x2   :  { %s14_s7 = sshll.u32 %s88_s6, 4  ;;  %p41_p0 = scmp.ne.s32.totalorder %s124_s0, %s40_s10  ;;  %s15_s7 = int_to_ptr.vmem [resolvable:$true] %s14_s7 }
   0x3   :  { %p44_p1 = scmp.lt.u32.totalorder %s40_s10, %s124_s0 }
   0x5   :  { %p46_p2 = pnand %p44_p1, %p41_p0 }
   0x7   :  { %49 = shalt.err (!%p46_p2)
}
   0x8   :  { %s50_s15 = scalar_lea.vmem %s15_s7, 64  ;;  %p55_p4 = scmp.lt.s32.totalorder %s15_s7, %s15_s7 }
   0x9   :  { %p51_p3 = scmp.ne.s32.totalorder %s15_s7, %s50_s15  ;;  %p56_p5 = scmp.lt.s32.totalorder %s50_s15, %s50_s15 }
   0xb   :  { %p57_p6 = por %p56_p5, %p55_p4 }
   0xd   :  { %p58_p7 = pnand %p57_p6, %p51_p3 }
   0xf   :  { %61 = shalt.err (!%p58_p7)
}
  0x10   :  { %17 = dma.hbm_to_vmem [thread:$0]  %s124_s0, 64, %s15_s7, [#allocation3]  }
  0x11   :  { %84 = dma.done.wait [#allocation3], 64  }
  0x12   :  { %85 = vsyncadd [#allocation3], 4294967232  ;;  %s89_s18 = smov [#allocation5]   ;;  %v21_v0 = vld [vmem:[#allocation2] sm:$0xf] }
  0x13   :  { %s29_s19 = sshll.u32 %s89_s18, 4  ;;  %22 = vst [vmem:[#allocation5] sm:$0xf] %v21_v0  ;;  %s30_s19 = int_to_ptr.vmem [resolvable:$true] %s29_s19 }
  0x14   :  { %s62_s20 = scalar_lea.vmem %s30_s19, 64  ;;  %p67_p9 = scmp.lt.s32.totalorder %s30_s19, %s30_s19 }
  0x15   :  { %p63_p8 = scmp.ne.s32.totalorder %s30_s19, %s62_s20  ;;  %p68_p10 = scmp.lt.s32.totalorder %s62_s20, %s62_s20 }
  0x17   :  { %p69_p11 = por %p68_p10, %p67_p9 }
  0x19   :  { %p70_p12 = pnand %p69_p11, %p63_p8 }
  0x1b   :  { %73 = shalt.err (!%p70_p12)
}
  0x1c   :  { %s74_s23 = scalar_lea.hbm %s125_s1, 64 }
  0x1d   :  { %p75_p13 = scmp.ne.s32.totalorder %s125_s1, %s74_s23  ;;  %p78_p0 = scmp.lt.u32.totalorder %s74_s23, %s125_s1 }
  0x1f   :  { %p80_p1 = pnand %p78_p0, %p75_p13 }
  0x21   :  { %83 = shalt.err (!%p80_p1)
}
  0x22   :  { %32 = dma.vmem_to_hbm [thread:$0]  %s30_s19, 64, %s125_s1, [#allocation4]  }
  0x23   :  { %86 = dma.done.wait [#allocation4], 64  }
  0x24   :  { %87 = vsyncadd [#allocation4], 4294967232 }
  0x25   :  { %36 = vsyncpa [#allocation3], 1 }
  0x26   :  { %37 = vsyncpa [#allocation4], 1 }

</bundles_post_ra>
